<compile_context>
chip_gen: v6e
topology: v6e:2x2x1
jax: 0.10.0
libtpu: 0.0.40
codegen_flags: <defaults>
</compile_context>

<pallas_src>
import jax
import jax.numpy as jnp
from jax import lax
from jax.experimental import pallas as pl
from jax.experimental.pallas import tpu as pltpu


def _cdiv(a, b):
    return (a + b - 1) // b


def _round_up(x, m):
    return _cdiv(x, m) * m


def _vmem_capacity_bytes():
    try:
        return int(pltpu.get_tpu_info().vmem_capacity_bytes)
    except Exception:
        return 64 * 1024 * 1024  # conservative fallback (v7x per-core VMEM)


# ----------------------------------------------------------------------------------
# Kernels
# ----------------------------------------------------------------------------------
def _cmajor_kernel(p_ref, w_ref, b_ref, o_ref, acc_ref):
    """Channel-major tile (Cout < 128): out[c, m] = relu(sum_k W[c,k] P[k,m] + b[c]).

    p_ref:   (1, TK, TM)  K-major im2col patches (output pixels on lanes)
    w_ref:   (Cp, TK)     BN-scale-folded weights (K on lanes)
    b_ref:   (Cp, 1)      folded BN bias
    o_ref:   (1, Cp, TM)  channel-major output tile (already NCHW-flat)
    acc_ref: (Cp, TM)     f32 accumulator, persists across the K grid axis
    """
    k = pl.program_id(2)

    @pl.when(k == 0)
    def _():
        acc_ref[...] = jnp.zeros_like(acc_ref)

    acc_ref[...] += jnp.dot(w_ref[...], p_ref[0],
                            preferred_element_type=jnp.float32)

    @pl.when(k == pl.num_programs(2) - 1)
    def _():
        y = acc_ref[...] + b_ref[...]
        o_ref[0] = jnp.maximum(y, 0.0).astype(o_ref.dtype)


def _lmajor_kernel(p_ref, w_ref, b_ref, o_ref, acc_ref):
    """Lane-major tile (Cout >= 128): out[m, c] = relu(sum_k P[m,k] W[k,c] + b[c]).

    p_ref:   (1, TM, TK)   im2col patches (contraction on lanes)
    w_ref:   (TK, TN)      BN-scale-folded weights (Cout on lanes)
    b_ref:   (1, TN)       folded BN bias
    o_ref:   (1, TM, TN)   lane-dense output tile
    acc_ref: (TM, TN)      f32 accumulator, persists across the K grid axis
    """
    k = pl.program_id(3)

    @pl.when(k == 0)
    def _():
        acc_ref[...] = jnp.zeros_like(acc_ref)

    acc_ref[...] += jnp.dot(p_ref[0], w_ref[...],
                            preferred_element_type=jnp.float32)

    @pl.when(k == pl.num_programs(3) - 1)
    def _():
        y = acc_ref[...] + b_ref[...]
        o_ref[0] = jnp.maximum(y, 0.0).astype(o_ref.dtype)


# ----------------------------------------------------------------------------------
# Wrapper
# ----------------------------------------------------------------------------------
def basic_conv2d(x_nchw, weight_oihw, gamma, beta, running_mean, running_var,
                 *, stride=1, padding=0, eps=1e-3, compute_dtype=jnp.bfloat16):
    """Equivalent of BasicConv2d.forward in eval mode (NCHW in / NCHW out)."""
    sh, sw = (stride, stride) if isinstance(stride, int) else stride
    ph, pw = (padding, padding) if isinstance(padding, int) else padding

    N, C_in, H, W = x_nchw.shape
    C_out, c_in_w, KH, KW = weight_oihw.shape
    assert c_in_w == C_in
    Ho = (H + 2 * ph - KH) // sh + 1
    Wo = (W + 2 * pw - KW) // sw + 1
    M = Ho * Wo
    K = KH * KW * C_in

    in_bytes = jnp.dtype(compute_dtype).itemsize
    out_dtype = x_nchw.dtype
    out_bytes = jnp.dtype(out_dtype).itemsize

    # Fold eval-mode BN into the conv: scale into weights, bias into the epilogue.
    scale = (gamma / jnp.sqrt(running_var + eps)).astype(jnp.float32)
    bias = (beta - running_mean * scale).astype(jnp.float32)

    # Cast to the compute dtype BEFORE pad/im2col so patches are materialized narrow.
    x = x_nchw.astype(compute_dtype)

    cap = _vmem_capacity_bytes()
    budget = min(int(cap * 0.45), 48 * 1024 * 1024)        # double-buffered tile budget
    vmem_limit = min(int(cap * 0.75), 96 * 1024 * 1024)

    channel_major = C_out < 128

    if channel_major:
        # ---------------- channel-major path (small Cout) ----------------
        Cp = _round_up(C_out, 8)
        TM = min(512, _round_up(M, 128))
        max_tk = 2048

        def plan(tm, mtk):
            nk = max(1, _cdiv(K, mtk))
            tk = _round_up(_cdiv(K, nk), 128)
            foot = (2 * (tk * tm + Cp * tk) * in_bytes     # patches + weights (x2 buf)
                    + 2 * Cp * tm * out_bytes              # output tile (x2 buf)
                    + Cp * tm * 4 + 2 * Cp * 4)            # f32 accumulator + bias
            return tk, nk, foot

        TK, n_k, foot = plan(TM, max_tk)
        while foot > budget:
            if max_tk > 512:
                max_tk //= 2
            elif TM > 128:
                TM //= 2
            else:
                break
            TK, n_k, foot = plan(TM, max_tk)

        Mp = _round_up(M, TM)
        # v7x has 2 TensorCores: make sure a "parallel" axis has >= 2 steps.
        if N == 1:
            while Mp // TM < 2 and TM > 128 and TM % 256 == 0:
                TM //= 2
                Mp = _round_up(M, TM)
        Kp = TK * n_k

        # K-major im2col straight from NCHW (output is already NCHW-flat).
        xp = jnp.pad(x, ((0, 0), (0, 0), (ph, ph), (pw, pw)))
        cols = []
        for kh in range(KH):
            for kw in range(KW):
                cols.append(
                    xp[:, :, kh:kh + sh * (Ho - 1) + 1:sh,
                       kw:kw + sw * (Wo - 1) + 1:sw].reshape(N, C_in, M))
        patches = jnp.concatenate(cols, axis=1)            # (N, K, M), k=(kh,kw,cin)
        patches = jnp.pad(patches, ((0, 0), (0, Kp - K), (0, Mp - M)))

        w = jnp.transpose(weight_oihw, (0, 2, 3, 1)).reshape(C_out, K)   # (Cout, K)
        w = (w.astype(jnp.float32) * scale[:, None]).astype(compute_dtype)
        w = jnp.pad(w, ((0, Cp - C_out), (0, Kp - K)))
        b2 = jnp.pad(bias, (0, Cp - C_out)).reshape(Cp, 1)

        grid = (N, Mp // TM, Kp // TK)
        out = pl.pallas_call(
            _cmajor_kernel,
            out_shape=jax.ShapeDtypeStruct((N, Cp, Mp), out_dtype),
            grid_spec=pltpu.PrefetchScalarGridSpec(
                num_scalar_prefetch=0,
                grid=grid,
                in_specs=[
                    pl.BlockSpec((1, TK, TM), lambda n, m, k: (n, k, m)),
                    pl.BlockSpec((Cp, TK), lambda n, m, k: (0, k)),
                    pl.BlockSpec((Cp, 1), lambda n, m, k: (0, 0)),
                ],
                out_specs=pl.BlockSpec((1, Cp, TM), lambda n, m, k: (n, 0, m)),
                scratch_shapes=[pltpu.VMEM((Cp, TM), jnp.float32)],
            ),
            compiler_params=pltpu.CompilerParams(
                dimension_semantics=("parallel", "parallel", "arbitrary"),
                vmem_limit_bytes=vmem_limit,
            ),
        )(patches, w, b2)

        return out[:, :C_out, :M].reshape(N, C_out, Ho, Wo)

    # ---------------- lane-major path (Cout >= 128) ----------------
    Np = _round_up(C_out, 128)
    TN = 128
    for cand in (512, 256):
        if Np % cand == 0:
            TN = cand
            break

    tm_align = 16 if in_bytes < 4 else 8
    TM = min(512, _round_up(M, tm_align))
    max_tk = 2048

    def plan(tm, tn, mtk):
        nk = max(1, _cdiv(K, mtk))
        tk = _round_up(_cdiv(K, nk), 128)
        foot = (2 * (tm * tk + tk * tn) * in_bytes         # patches + weights (x2 buf)
                + 2 * tm * tn * out_bytes                  # output tile (x2 buf)
                + tm * tn * 4 + 2 * tn * 4)                # f32 accumulator + bias
        return tk, nk, foot

    TK, n_k, foot = plan(TM, TN, max_tk)
    while foot > budget:
        if max_tk > 512:
            max_tk //= 2
        elif TM >= 2 * tm_align and (TM // 2) % tm_align == 0:
            TM //= 2
        elif TN > 128:
            TN //= 2
        else:
            break
        TK, n_k, foot = plan(TM, TN, max_tk)

    Mp = _round_up(M, TM)
    # v7x: guarantee >= 2 steps on a "parallel" axis when N == 1 and only one Cout tile.
    if N == 1 and Np // TN == 1:
        while Mp // TM < 2 and TM >= 2 * tm_align and (TM // 2) % tm_align == 0:
            TM //= 2
            Mp = _round_up(M, TM)
    Kp = TK * n_k

    xh = jnp.transpose(x, (0, 2, 3, 1))                    # NCHW -> NHWC
    xh = jnp.pad(xh, ((0, 0), (ph, ph), (pw, pw), (0, 0)))
    cols = []
    for kh in range(KH):
        for kw in range(KW):
            cols.append(xh[:, kh:kh + sh * (Ho - 1) + 1:sh,
                           kw:kw + sw * (Wo - 1) + 1:sw, :])
    patches = jnp.concatenate(cols, axis=-1).reshape(N, M, K)   # (N, M, K)
    patches = jnp.pad(patches, ((0, 0), (0, Mp - M), (0, Kp - K)))

    w = jnp.transpose(weight_oihw, (2, 3, 1, 0)).reshape(K, C_out)   # (K, Cout)
    w = (w.astype(jnp.float32) * scale[None, :]).astype(compute_dtype)
    w = jnp.pad(w, ((0, Kp - K), (0, Np - C_out)))
    b2 = jnp.pad(bias, (0, Np - C_out)).reshape(1, Np)

    # Grid order (N, c, m, k): with a single K step the weight block index is constant
    # across the whole M sweep, so it is fetched once per Cout tile (no re-streaming).
    grid = (N, Np // TN, Mp // TM, Kp // TK)
    out = pl.pallas_call(
        _lmajor_kernel,
        out_shape=jax.ShapeDtypeStruct((N, Mp, Np), out_dtype),
        grid_spec=pltpu.PrefetchScalarGridSpec(
            num_scalar_prefetch=0,
            grid=grid,
            in_specs=[
                pl.BlockSpec((1, TM, TK), lambda n, c, m, k: (n, m, k)),
                pl.BlockSpec((TK, TN), lambda n, c, m, k: (k, c)),
                pl.BlockSpec((1, TN), lambda n, c, m, k: (0, c)),
            ],
            out_specs=pl.BlockSpec((1, TM, TN), lambda n, c, m, k: (n, m, c)),
            scratch_shapes=[pltpu.VMEM((TM, TN), jnp.float32)],
        ),
        compiler_params=pltpu.CompilerParams(
            dimension_semantics=("parallel", "parallel", "parallel", "arbitrary"),
            vmem_limit_bytes=vmem_limit,
        ),
    )(patches, w, b2)

    out = out[:, :M, :C_out].reshape(N, Ho, Wo, C_out)
    return jnp.transpose(out, (0, 3, 1, 2))                # NHWC -> NCHW


# ----------------------------------------------------------------------------------
# Reference + test
# ----------------------------------------------------------------------------------
def _reference(x, w, gamma, beta, mean, var, *, stride=1, padding=0, eps=1e-3):
    y = lax.conv_general_dilated(
        x, w, window_strides=(stride, stride),
        padding=((padding, padding), (padding, padding)),
        dimension_numbers=("NCHW", "OIHW", "NCHW"),
        precision=lax.Precision.HIGHEST)
    inv = gamma / jnp.sqrt(var + eps)
    y = y * inv[None, :, None, None] + (beta - mean * inv)[None, :, None, None]
    return jnp.maximum(y, 0.0)


if __name__ == "__main__":
    key = jax.random.PRNGKey(0)

    def make_inputs(k, C_in, C_out, KH, KW, N, H, W):
        ks = jax.random.split(k, 6)
        x = jax.random.normal(ks[0], (N, C_in, H, W), jnp.float32)
        w = jax.random.normal(ks[1], (C_out, C_in, KH, KW), jnp.float32) * 0.1
        gamma = 1.0 + 0.1 * jax.random.normal(ks[2], (C_out,), jnp.float32)
        beta = 0.1 * jax.random.normal(ks[3], (C_out,), jnp.float32)
        mean = 0.1 * jax.random.normal(ks[4], (C_out,), jnp.float32)
        var = jax.random.uniform(ks[5], (C_out,), jnp.float32, minval=0.5, maxval=1.5)
        return x, w, gamma, beta, mean, var

    k1, k2 = jax.random.split(key)

    # 1) BasicConv2d(4, 8, kernel_size=3, padding=1): channel-major (Cout < 128) path.
    args1 = make_inputs(k1, 4, 8, 3, 3, 2, 16, 16)
    ref1 = _reference(*args1, padding=1)

    out1_bf16 = jax.block_until_ready(basic_conv2d(*args1, padding=1))   # default bf16
    assert out1_bf16.shape == ref1.shape, out1_bf16.shape
    assert jnp.allclose(out1_bf16, ref1, atol=1e-1, rtol=5e-2), \
        float(jnp.max(jnp.abs(out1_bf16 - ref1)))

    out1_f32 = jax.block_until_ready(
        basic_conv2d(*args1, padding=1, compute_dtype=jnp.float32))
    assert jnp.allclose(out1_f32, ref1, atol=5e-4, rtol=5e-4), \
        float(jnp.max(jnp.abs(out1_f32 - ref1)))

    # 2) BasicConv2d(8, 128, kernel_size=3, padding=1): lane-major (Cout >= 128) path.
    args2 = make_inputs(k2, 8, 128, 3, 3, 1, 8, 8)
    ref2 = _reference(*args2, padding=1)

    out2_bf16 = jax.block_until_ready(basic_conv2d(*args2, padding=1))
    assert jnp.allclose(out2_bf16, ref2, atol=1e-1, rtol=5e-2), \
        float(jnp.max(jnp.abs(out2_bf16 - ref2)))

    out2_f32 = jax.block_until_ready(
        basic_conv2d(*args2, padding=1, compute_dtype=jnp.float32))
    assert jnp.allclose(out2_f32, ref2, atol=5e-4, rtol=5e-4), \
        float(jnp.max(jnp.abs(out2_f32 - ref2)))

    print("KERNEL_OK")
</pallas_src>

<mosaic_0001>
module attributes {stable_mosaic.version = 11 : i64} {
  func.func @_cmajor_kernel(%arg0: i32, %arg1: i32, %arg2: i32, %arg3: memref<1x128x256xbf16, #tpu.memory_space<vmem>>, %arg4: memref<8x128xbf16, #tpu.memory_space<vmem>>, %arg5: memref<8x1xf32, #tpu.memory_space<vmem>>, %arg6: memref<1x8x256xf32, #tpu.memory_space<vmem>>, %arg7: memref<8x256xf32, #tpu.memory_space<vmem>>) attributes {dimension_semantics = [#tpu.dimension_semantics<parallel>, #tpu.dimension_semantics<parallel>, #tpu.dimension_semantics<arbitrary>], iteration_bounds = array<i64: 2, 1, 1>, scalar_prefetch = 0 : i64, scratch_operands = 1 : i64, tpu.core_type = #tpu.core_type<tc>, window_params = [{transform_indices = @transform_0, window_bounds = array<i64: 1, 128, 256>}, {transform_indices = @transform_1, window_bounds = array<i64: 8, 128>}, {pipeline_mode = #tpu.pipeline_mode<synchronous>, transform_indices = @transform_2, window_bounds = array<i64: 8, 1>}, {transform_indices = @transform_3, window_bounds = array<i64: 1, 8, 256>}]} {
    %c0_i32 = arith.constant 0 : i32
    %0 = arith.cmpi eq, %arg2, %c0_i32 : i32
    %1 = arith.extui %0 : i1 to i32
    %c0_i32_0 = arith.constant 0 : i32
    %2 = arith.cmpi ne, %1, %c0_i32_0 : i32
    scf.if %2 {
      %cst_11 = arith.constant 0.000000e+00 : f32
      %13 = vector.broadcast %cst_11 : f32 to vector<8x256xf32>
      %c0_12 = arith.constant 0 : index
      %c0_13 = arith.constant 0 : index
      %14 = vector.load %arg7[%c0_12, %c0_13] : memref<8x256xf32, #tpu.memory_space<vmem>>, vector<8x256xf32>
      tpu.vector_store %arg7[%c0_12, %c0_13], %13 {strides = array<i32>} : memref<8x256xf32, #tpu.memory_space<vmem>>, vector<8x256xf32>,
    } else {
    }
    %c0 = arith.constant 0 : index
    %c0_1 = arith.constant 0 : index
    %3 = vector.load %arg7[%c0, %c0_1] : memref<8x256xf32, #tpu.memory_space<vmem>>, vector<8x256xf32>
    %c0_2 = arith.constant 0 : index
    %c0_3 = arith.constant 0 : index
    %4 = vector.load %arg4[%c0_2, %c0_3] : memref<8x128xbf16, #tpu.memory_space<vmem>>, vector<8x128xbf16>
    %c0_4 = arith.constant 0 : index
    %c0_5 = arith.constant 0 : index
    %c0_6 = arith.constant 0 : index
    %5 = vector.load %arg3[%c0_4, %c0_5, %c0_6] : memref<1x128x256xbf16, #tpu.memory_space<vmem>>, vector<1x128x256xbf16>
    %6 = vector.shape_cast %5 : vector<1x128x256xbf16> to vector<128x256xbf16>
    %cst = arith.constant dense<0.000000e+00> : vector<8x256xf32>
    %7 = tpu.matmul %4, %6, %cst {dimension_numbers = #tpu.dot_dimension_numbers<[1], [0], [0], [1], [0, 0, 1, 1], [], []>} : vector<8x128xbf16>, vector<128x256xbf16>, vector<8x256xf32> -> vector<8x256xf32>
    %8 = arith.addf %3, %7 : vector<8x256xf32>
    %c0_7 = arith.constant 0 : index
    %c0_8 = arith.constant 0 : index
    %9 = vector.load %arg7[%c0_7, %c0_8] : memref<8x256xf32, #tpu.memory_space<vmem>>, vector<8x256xf32>
    tpu.vector_store %arg7[%c0_7, %c0_8], %8 {strides = array<i32>} : memref<8x256xf32, #tpu.memory_space<vmem>>, vector<8x256xf32>,
    %c0_i32_9 = arith.constant 0 : i32
    %10 = arith.cmpi eq, %arg2, %c0_i32_9 : i32
    %11 = arith.extui %10 : i1 to i32
    %c0_i32_10 = arith.constant 0 : i32
    %12 = arith.cmpi ne, %11, %c0_i32_10 : i32
    scf.if %12 {
      %c0_11 = arith.constant 0 : index
      %c0_12 = arith.constant 0 : index
      %13 = vector.load %arg7[%c0_11, %c0_12] : memref<8x256xf32, #tpu.memory_space<vmem>>, vector<8x256xf32>
      %c0_13 = arith.constant 0 : index
      %c0_14 = arith.constant 0 : index
      %14 = vector.load %arg5[%c0_13, %c0_14] : memref<8x1xf32, #tpu.memory_space<vmem>>, vector<8x1xf32>
      %15 = vector.broadcast %14 : vector<8x1xf32> to vector<8x256xf32>
      %16 = arith.addf %13, %15 : vector<8x256xf32>
      %cst_15 = arith.constant 0.000000e+00 : f32
      %17 = vector.broadcast %cst_15 : f32 to vector<8x256xf32>
      %18 = arith.maximumf %16, %17 : vector<8x256xf32>
      %c0_16 = arith.constant 0 : index
      %c0_17 = arith.constant 0 : index
      %c0_18 = arith.constant 0 : index
      %19 = vector.load %arg6[%c0_16, %c0_17, %c0_18] : memref<1x8x256xf32, #tpu.memory_space<vmem>>, vector<1x8x256xf32>
      %20 = vector.shape_cast %19 : vector<1x8x256xf32> to vector<8x256xf32>
      %21 = vector.shape_cast %18 : vector<8x256xf32> to vector<1x8x256xf32>
      tpu.vector_store %arg6[%c0_16, %c0_17, %c0_18], %21 {strides = array<i32>} : memref<1x8x256xf32, #tpu.memory_space<vmem>>, vector<1x8x256xf32>,
    } else {
    }
    return
  }
  func.func @transform_0(%arg0: i32, %arg1: i32, %arg2: i32) -> (i32, i32, i32) {
    %c0_i32 = arith.constant 0 : i32
    return %arg0, %arg2, %arg1 : i32, i32, i32
  }
  func.func @transform_1(%arg0: i32, %arg1: i32, %arg2: i32) -> (i32, i32) {
    %c0_i32 = arith.constant 0 : i32
    %c0_i32_0 = arith.constant 0 : i32
    return %c0_i32, %arg2 : i32, i32
  }
  func.func @transform_2(%arg0: i32, %arg1: i32, %arg2: i32) -> (i32, i32) {
    %c0_i32 = arith.constant 0 : i32
    %c0_i32_0 = arith.constant 0 : i32
    %c0_i32_1 = arith.constant 0 : i32
    return %c0_i32, %c0_i32_0 : i32, i32
  }
  func.func @transform_3(%arg0: i32, %arg1: i32, %arg2: i32) -> (i32, i32, i32) {
    %c0_i32 = arith.constant 0 : i32
    %c0_i32_0 = arith.constant 0 : i32
    return %arg0, %c0_i32, %arg1 : i32, i32, i32
  }
}

</mosaic_0001>

<bundles_post_ra>
// kernel: tpu_custom_call.1
= control target key start
LH: loop header
LB: loop body
LE: loop exit
PB: predicated region body
PF: predicated region fallthrough
CT: control target
= control target key end

     0   :  { %8 = vsyncpa [#allocation4], 0  ;;  %s950_s0 = inlined_call_operand.hbm [shape: bf16[2,128,256], index: 0, kind: input, shape index: {}]   ;;  %s951_s1 = inlined_call_operand.vmem [shape: bf16[8,128], index: 1, kind: input, shape index: {}]   ;;  %s952_s2 = inlined_call_operand.vmem [shape: f32[8,1], index: 2, kind: input, shape index: {}]   ;;  %s953_s3 = inlined_call_operand.hbm [shape: f32[2,8,256], index: 3, kind: output, shape index: {}]  }
   0x1   :  { %10 = vsyncpa [#allocation4 + $0x1], 0 }
   0x2   :  { %11 = vsyncpa [#allocation5], 0 }
   0x3   :  { %13 = vsyncpa [#allocation5 + $0x1], 0  ;;  %s787_s12 = smov 0   ;;  %s789_s13 = smov 0  }
   0x4   :  { %s791_s14 = smov 0   ;;  %s793_s15 = smov 0  }
   0x5   :  { %s795_s16 = smov 0   ;;  %s797_s17 = smov 0  }
   0x6 LB: > { %s528_s18 = sadd.s32 4294967295, %s760_s17   ;;  %s529_s19 = sadd.s32 4294967294, %s760_s17   ;;  %s760_s17 = sphi %s797_s17, %s19_s17   ;;  %s756_s16 = sphi %s795_s16, %s964_s16   ;;  %s752_s15 = sphi %s793_s15, %s963_s15   ;;  %s748_s14 = sphi %s791_s14, %s962_s14   ;;  %s744_s13 = sphi %s789_s13, %s961_s13   ;;  %s740_s12 = sphi %s787_s12, %s960_s12  }
   0x7   : > { %s38_s20 = sadd.s32 1, %s756_s16  ;;  %s49_s21 = sadd.s32 1, %s748_s14 }
   0x8   : > { %p40_p0 = scmp.ge.s32.totalorder %s38_s20, 2  ;;  %p56_p1 = scmp.ne.s32.totalorder %s748_s14, %s744_s13 }
   0x9   : > { %p57_p2 = scmp.eq.s32.totalorder %s760_s17, 0  ;;  %p62_p3 = scmp.ne.s32.totalorder %s744_s13, %s740_s12 }
   0xa   : > { %s966_s20 = smov (%p40_p0, %s38_s20), 0  ;;  %p63_p5 = scmp.eq.s32.totalorder %s528_s18, 0 }
   0xb   : > { %p828_p4 = por %p57_p2, %p56_p1  ;;  %s42_s23 = ssub.s32 %s756_s16, %s966_s20 }
   0xc   : > { %p135_p6 = scmp.eq.s32.totalorder %s528_s18, 1  ;;  %p47_p7 = scmp.eq.s32.totalorder %s42_s23, 0 }
   0xd   : > { %p834_p8 = por %p63_p5, %p62_p3  ;;  %p141_p10 = scmp.eq.s32.totalorder %s529_s19, 1 }
   0xe   : > { %p838_p9 = por %p135_p6, %p56_p1  ;;  %p574_p13 = scmp.lt.s32.totalorder %s760_s17, 2 }
   0xf   : > { %s843_s26 = scalar_select %p47_p7, %s748_s14, %s49_s21  }
  0x10   : > { %p845_p11 = por %p141_p10, %p62_p3  ;;  %s171_s28 = sand.u32 1, %s748_s14  }
  0x11   : > { %s533_s29 = sshll.u32 %s171_s28, 7  ;;  %s560_s30 = sshll.u32 %s756_s16, 11 }
  0x12   : > { %s186_s6 = scalar_lea.hbm %s950_s0, %s560_s30  ;;  %s175_s7 = scalar_lea.vmem [#allocation3], %s533_s29 }
  0x13   : > { %s187_s8 = sshll.u32 %s175_s7, 4  ;;  %p858_p0 = pnand %p574_p13, %p828_p4  ;;  %s188_s8 = int_to_ptr.vmem [resolvable:$true] %s187_s8 }
  0x14   : > { %p536_p1 = scmp.ge.s32.totalorder %s760_s17, 1  ;;  %s172_s10 = scalar_lea.sflag [#allocation4], %s171_s28 }
  0x15   : > { %p654_p2 = pneg %p858_p0  ;;  %s665_s11 = scalar_lea.vmem %s188_s8, 2048 }
  0x16   : > { %p666_p3 = scmp.ne.s32.totalorder %s188_s8, %s665_s11  ;;  %s762_s18 = smov [#allocation3]  }
  0x17   : > { %s670_s19 = sshll.u32 %s762_s18, 4  ;;  %s671_s19 = int_to_ptr.vmem [resolvable:$false] %s670_s19 }
  0x18   : > { %p668_p5 = pnand %p666_p3, %p654_p2  ;;  %s672_s21 = scalar_lea.vmem %s671_s19, 4096 }
  0x19   : > { %p673_p7 = scmp.lt.s32.totalorder %s188_s8, %s671_s19  ;;  %p674_p10 = scmp.lt.s32.totalorder %s672_s21, %s665_s11 }
  0x1a   : > { %p669_p6 = pneg %p668_p5 }
  0x1b   : > { %p675_p12 = por %p674_p10, %p673_p7 }
  0x1d   : > { %p676_p4 = pnand %p675_p12, %p669_p6 }
  0x1f   : > { %679 = shalt.err (!%p676_p4)
}
  0x20   : > { %s763_s22 = smov 128   ;;  %s764_s23 = smov 8  }
  0x21   : > { %569 = dma.hbm_to_vmem [thread:$0]  (!%p858_p0), %s186_s6, 2048, %s188_s8, %s172_s10, %s763_s22, %s763_s22, %s764_s23  }
  0x22   : > { %p195_p13 = scmp.lt.s32.totalorder %s760_s17, 3 }
  0x24   : > { %p196_p2 = pnand %p536_p1, %p195_p13 }
  0x25   : > { %s871_s28 = sand.u32 (!%p196_p2), 1, %s744_s13  }
  0x26   : > { %199 = sbr.rel (%p196_p2) target bundleno = 290 (0x122), region = 32  ;;  %s537_s29 = sshll.u32 (!%p196_p2), %s871_s28, 7 }
  0x27   : > { %s202_s30 = scalar_lea.sflag (!%p196_p2), [#allocation4], %s871_s28  ;;  %s875_s4 = scalar_lea.vmem (!%p196_p2), [#allocation3], %s537_s29 }
  0x2b   : > { %731 = dma.done.wait (%p834_p8), %s202_s30, 2048  }
  0x2c   : > { %733 = vsyncadd (%p834_p8), %s202_s30, 4294965248  ;;  %v765_v0 = vmov 0   ;;  %v628_v1 = vld [vmem:[%s875_s4 + $0x74] ss:$8 sps:$4 sm:$0xff]   ;;  %v630_v2 = vld [vmem:[%s875_s4 + $0x70] ss:$8 sps:$4 sm:$0xff]  }
  0x2d   : > { %377 = vmatprep.mubr.bf16.mxu0 %v765_v0  ;;  %627 = vset.pattern.permute.xlu0 %v765_v0  ;;  %v631_v3 = vld [vmem:[%s875_s4 + $0x64] ss:$8 sps:$4 sm:$0xff]   ;;  %v633_v4 = vld [vmem:[%s875_s4 + $0x60] ss:$8 sps:$4 sm:$0xff]   ;;  %v634_v5 = vld [vmem:[%s875_s4 + $0x54] ss:$8 sps:$4 sm:$0xff]  }
  0x2e   : > { %345 = vmatprep.subr.bf16.mxu0 %v628_v1  ;;  %v636_v6 = vld [vmem:[%s875_s4 + $0x50] ss:$8 sps:$4 sm:$0xff]   ;;  %v637_v7 = vld [vmem:[%s875_s4 + $0x44] ss:$8 sps:$4 sm:$0xff]   ;;  %v639_v8 = vld [vmem:[%s875_s4 + $0x40] ss:$8 sps:$4 sm:$0xff]  }
  0x2f   : > { %346 = vmatpush1.bf16.msra.mxu0 %v630_v2  ;;  %v395_v9 = vld [vmem:[%s952_s2] sm:$0xff]  ;;  %v640_v10 = vld [vmem:[%s875_s4 + $0x34] ss:$8 sps:$4 sm:$0xff]   ;;  %v642_v11 = vld [vmem:[%s875_s4 + $0x30] ss:$8 sps:$4 sm:$0xff]   ;;  %s538_s8 = sshll.u32 %s871_s28, 4 }
  0x30   : > { %347 = vmatprep.subr.bf16.mxu0 %v631_v3  ;;  %398 = vperm.xlu0 %627, %v395_v9   ;;  %v643_v12 = vld [vmem:[%s875_s4 + $0x24] ss:$8 sps:$4 sm:$0xff]   ;;  %v645_v13 = vld [vmem:[%s875_s4 + $0x20] ss:$8 sps:$4 sm:$0xff]   ;;  %v646_v14 = vld [vmem:[%s875_s4 + $0x14] ss:$8 sps:$4 sm:$0xff]  }
  0x31   : > { %v648_v15 = vld [vmem:[%s875_s4 + $0x10] ss:$8 sps:$4 sm:$0xff]   ;;  %v649_v16 = vld [vmem:[%s875_s4 + $0x4] ss:$8 sps:$4 sm:$0xff]   ;;  %v651_v17 = vld [vmem:[%s875_s4] ss:$8 sps:$4 sm:$0xff]  }
  0x32   : > { %v248_v18 = vld [vmem:[%s951_s1] sm:$0xf]  ;;  %s561_s9 = sshll.u32 %s752_s15, 8  ;;  %s231_s10 = scalar_lea.vmem [#allocation6], %s538_s8 }
  0x33   : > { %348 = vmatpush1.bf16.msra.mxu0 %v633_v4  ;;  %s424_s11 = sshll.u32 %s231_s10, 4  ;;  %s908_s21 = scalar_lea.hbm %s953_s3, %s561_s9  ;;  %s425_s11 = int_to_ptr.vmem [resolvable:$true] %s424_s11 }
  0x34   : > { %349 = vmatprep.subr.bf16.mxu0 %v634_v5  ;;  %s408_s22 = scalar_lea.sflag [#allocation5], %s871_s28  ;;  %s680_s23 = scalar_lea.vmem %s425_s11, 256 }
  0x35   : > { %p681_p8 = scmp.ne.s32.totalorder %s425_s11, %s680_s23  ;;  %s766_s15 = smov [#allocation6]  }
  0x36   : > { %s684_s29 = sshll.u32 %s766_s15, 4  ;;  %s685_s29 = int_to_ptr.vmem [resolvable:$false] %s684_s29 }
  0x37   : > { %350 = vmatpush1.bf16.msra.mxu0 %v636_v6  ;;  %p682_p12 = pnand %p681_p8, %p838_p9  ;;  %s686_s30 = scalar_lea.vmem %s685_s29, 512 }
  0x38   : > { %351 = vmatprep.subr.bf16.mxu0 %v637_v7  ;;  %p687_p1 = scmp.lt.s32.totalorder %s425_s11, %s685_s29  ;;  %p688_p3 = scmp.lt.s32.totalorder %s686_s30, %s680_s23 }
  0x39   : > { %p683_p0 = pneg %p682_p12 }
  0x3a   : > { %p689_p5 = por %p688_p3, %p687_p1 }
  0x3b   : > { %352 = vmatpush1.bf16.msra.mxu0 %v639_v8 }
  0x3c   : > { %353 = vmatprep.subr.bf16.mxu0 %v640_v10  ;;  %p690_p6 = pnand %p689_p5, %p683_p0 }
  0x3f   : > { %354 = vmatpush1.bf16.msra.mxu0 %v642_v11 }
  0x40   : > { %355 = vmatprep.subr.bf16.mxu0 %v643_v12 }
  0x43   : > { %356 = vmatpush1.bf16.msra.mxu0 %v645_v13 }
  0x44   : > { %357 = vmatprep.subr.bf16.mxu0 %v646_v14 }
  0x47   : > { %358 = vmatpush1.bf16.msra.mxu0 %v648_v15 }
  0x48   : > { %359 = vmatprep.subr.bf16.mxu0 %v649_v16 }
  0x4b   : > { %360 = vmatpush1.bf16.msra.mxu0 %v651_v17 }
  0x4e   : > { %378 = vmatmul.mubr.bf16.vlgmr.msra.gmra.mxu0 %v248_v18 }
  0xab   : > { %v399_v19 = vpop.permute.xlu0 %398 }
 0x10e   : > { %v379_v20 = vpop.f32.mrf.mxu0 }
 0x10f   : > { %v401_v21 = vadd.f32 %v399_v19, %v379_v20 }
 0x110   : > { %v381_v22 = vpop.f32.mrf.mxu0 }
 0x111   : > { %v403_v23 = vmax.f32 %v401_v21, 0.0  ;;  %v402_v24 = vadd.f32 %v399_v19, %v381_v22 }
 0x112   : > { %v383_v25 = vpop.f32.mrf.mxu0 }
 0x113   : > { %405 = vst [vmem:[%s231_s10] sm:$0xff] %v403_v23  ;;  %v404_v26 = vmax.f32 %v402_v24, 0.0 }
 0x114   : > { %v384_v27 = vpop.f32.mrf.mxu0 }
 0x115   : > { %406 = vst [vmem:[%s231_s10 + $0x8] sm:$0xff] %v404_v26 }
 0x116   : > { %693 = shalt.err (!%p690_p6)
}
 0x117   : > { %s694_s4 = scalar_lea.hbm %s908_s21, 256  ;;  %s698_s5 = scalar_lea.hbm %s953_s3, 512 }
 0x118   : > { %p695_p7 = scmp.ne.s32.totalorder %s908_s21, %s694_s4  ;;  %p699_p13 = scmp.lt.s32.totalorder %s908_s21, %s953_s3 }
 0x119   : > { %p700_p2 = scmp.lt.s32.totalorder %s698_s5, %s694_s4 }
 0x11a   : > { %p696_p10 = pnand %p695_p7, %p838_p9 }
 0x11b   : > { %p701_p8 = por %p700_p2, %p699_p13 }
 0x11c   : > { %p697_p4 = pneg %p696_p10 }
 0x11e   : > { %p702_p12 = pnand %p701_p8, %p697_p4 }
 0x120   : > { %705 = shalt.err (!%p702_p12)
}
 0x121   : > { %564 = dma.vmem_to_hbm [thread:$0]  (%p838_p9), %s425_s11, 256, %s908_s21, %s408_s22  }
 0x122 PF: > { %s436_s8 = sand.u32 1, %s740_s12   ;;  %p959_p0 = scmp.ge.s32.totalorder %s760_s17, 2 }
 0x123   : > { %s437_s9 = scalar_lea.sflag [#allocation5], %s436_s8 }
 0x124   : > { %p571_p1 = pnand %p959_p0, %p845_p11 }
 0x126   : > { %p572_p3 = pneg %p571_p1 }
 0x128   : > { %735 = dma.done.wait (%p572_p3), %s437_s9, 256  }
 0x129   : > { %737 = vsyncadd (%p572_p3), %s437_s9, 4294967040  ;;  %s19_s17 = sadd.s32 1, %s760_s17   ;;  %s960_s12 = smov %s744_s13 }
 0x12a   : > { %p16_p5 = scmp.ge.s32.totalorder %s19_s17, 4   ;;  %s961_s13 = smov %s748_s14 }
 0x12b   : > { %s962_s14 = smov %s843_s26  ;;  %s963_s15 = smov %s756_s16 }
 0x12c   : > { %s964_s16 = smov %s966_s20  ;;  %18 = sbr.rel (!%p16_p5) target bundleno = 6 (0x6), region = 88 }
 0x131   :  { %442 = vsyncpa [#allocation4], 1 }
 0x132   :  { %444 = vsyncpa [#allocation4 + $0x1], 1 }
 0x133   :  { %445 = vsyncpa [#allocation5], 1 }
 0x134   :  { %447 = vsyncpa [#allocation5 + $0x1], 1 }

</bundles_post_ra>
